<compile_context>
chip_gen: v7x
topology: tpu7x:2x2x1
jax: 0.10.0
libtpu: 0.0.40
codegen_flags: <defaults>
</compile_context>

<pallas_src>
import functools

import numpy as np
import jax
import jax.numpy as jnp
from jax import lax
from jax.experimental import pallas as pl
from jax.experimental.pallas import tpu as pltpu  # noqa: F401  (TPU backend)


def _round_up(x, m):
    return (x + m - 1) // m * m


# ----------------------------- fused Pallas kernel ---------------------------


def _decoder_step_kernel(tok_ref, emb_ref, h_in_ref, c_in_ref,
                         wih_ref, whh_ref, b_ref, wout_ref, bout_ref,
                         pred_ref, h_out_ref, c_out_ref):
    """Fused decoder step.

    tok_ref  : (Bp, 1)  int32      token ids (padded batch)
    emb_ref  : (V, E)   f32        embedding table
    h_in_ref : (L, Bp, H) f32      previous hidden state (PyTorch layout)
    c_in_ref : (L, Bp, H) f32      previous cell state
    wih_ref  : (L, 4, Din, H) f32  gate-major W_ih^T, zero-padded to Din
    whh_ref  : (L, 4, H, H)   f32  gate-major W_hh^T
    b_ref    : (L, 4, 1, H)   f32  b_ih + b_hh, gate-major
    wout_ref : (H, Vp)  f32        output projection (vocab padded to Vp)
    bout_ref : (1, Vp)  f32
    pred_ref : (Bp, Vp) f32        logits
    h_out_ref, c_out_ref : (L, Bp, H) f32   new state (aliased to inputs)
    """
    n_layers = h_in_ref.shape[0]
    Bp, H = h_in_ref.shape[1], h_in_ref.shape[2]
    V, E = emb_ref.shape
    D_in = wih_ref.shape[2]

    # ---- embedding gather as one-hot @ table (no XLU gather) ----
    tok = tok_ref[...]                                          # (Bp, 1) int32
    vocab_iota = lax.broadcasted_iota(jnp.int32, (Bp, V), 1)    # (Bp, V)
    onehot = (vocab_iota == tok).astype(jnp.float32)            # (Bp, V)
    x = jnp.dot(onehot, emb_ref[...],
                preferred_element_type=jnp.float32)             # (Bp, E)
    # dropout on embedded: identity (eval mode)

    def pad_cols(a, width):
        if a.shape[1] < width:
            a = jnp.concatenate(
                [a, jnp.zeros((a.shape[0], width - a.shape[1]), a.dtype)],
                axis=1)
        return a

    x = pad_cols(x, D_in)                                       # (Bp, D_in)

    last_h = None
    for layer in range(n_layers):        # static unroll (n_layers is small)
        h_prev = h_in_ref[layer]         # (Bp, H)
        c_prev = c_in_ref[layer]         # (Bp, H)

        # Per-gate dots: each gate lives in its own vregs (no lane slicing).
        gates = [
            jnp.dot(x, wih_ref[layer, k], preferred_element_type=jnp.float32)
            + jnp.dot(h_prev, whh_ref[layer, k],
                      preferred_element_type=jnp.float32)
            + b_ref[layer, k]
            for k in range(4)
        ]
        i_g = jax.nn.sigmoid(gates[0])
        f_g = jax.nn.sigmoid(gates[1])
        g_g = jnp.tanh(gates[2])
        o_g = jax.nn.sigmoid(gates[3])

        c_new = f_g * c_prev + i_g * g_g
        h_new = o_g * jnp.tanh(c_new)

        h_out_ref[layer] = h_new
        c_out_ref[layer] = c_new

        last_h = h_new
        x = pad_cols(h_new, D_in)        # inter-layer dropout: identity (eval)

    # ---- output projection (lane-dense: Vp is a multiple of 128) ----
    pred_ref[...] = (
        jnp.dot(last_h, wout_ref[...], preferred_element_type=jnp.float32)
        + bout_ref[...]
    )


# ------------------------------ Decoder wrapper -------------------------------


class DecoderPallas:
    """Pallas port of the PyTorch Decoder (single decoding step)."""

    def __init__(self, output_dim, emb_dim, hid_dim, n_layers, dropout, key):
        self.output_dim = output_dim
        self.emb_dim = emb_dim
        self.hid_dim = hid_dim
        self.n_layers = n_layers
        self.dropout = dropout                  # eval mode -> identity
        self.d_in = max(emb_dim, hid_dim)       # shared padded input width
        self.v_pad = _round_up(output_dim, 128)  # lane-dense vocab padding

        keys = jax.random.split(key, 3 + 4 * n_layers)
        k = iter(keys)

        # Embedding: N(0, 1) like nn.Embedding default.
        self.embedding = jax.random.normal(
            next(k), (output_dim, emb_dim), dtype=jnp.float32)

        # LSTM params, uniform(-1/sqrt(hid), 1/sqrt(hid)) like PyTorch.
        # Stored gate-major & pre-transposed: (n_layers, 4, d_in, H).
        bound = 1.0 / (hid_dim ** 0.5)
        wih_list, whh_list, b_list = [], [], []
        for layer in range(n_layers):
            in_dim = emb_dim if layer == 0 else hid_dim
            wih = jax.random.uniform(next(k), (4 * hid_dim, in_dim),
                                     minval=-bound, maxval=bound,
                                     dtype=jnp.float32)
            whh = jax.random.uniform(next(k), (4 * hid_dim, hid_dim),
                                     minval=-bound, maxval=bound,
                                     dtype=jnp.float32)
            b_ih = jax.random.uniform(next(k), (4 * hid_dim,),
                                      minval=-bound, maxval=bound,
                                      dtype=jnp.float32)
            b_hh = jax.random.uniform(next(k), (4 * hid_dim,),
                                      minval=-bound, maxval=bound,
                                      dtype=jnp.float32)
            # (4H, in) -> (4, in, H), zero-pad rows to d_in
            w_g = jnp.transpose(wih.reshape(4, hid_dim, in_dim), (0, 2, 1))
            w_g = jnp.pad(w_g, ((0, 0), (0, self.d_in - in_dim), (0, 0)))
            wih_list.append(w_g)
            wh_g = jnp.transpose(whh.reshape(4, hid_dim, hid_dim), (0, 2, 1))
            whh_list.append(wh_g)
            b_list.append((b_ih + b_hh).reshape(4, 1, hid_dim))

        self.wih = jnp.stack(wih_list)          # (L, 4, d_in, H)
        self.whh = jnp.stack(whh_list)          # (L, 4, H, H)
        self.b = jnp.stack(b_list)              # (L, 4, 1, H)

        # Output Linear: uniform(-1/sqrt(hid), 1/sqrt(hid)); stored (H, Vp).
        w_out = jax.random.uniform(next(k), (output_dim, hid_dim),
                                   minval=-bound, maxval=bound,
                                   dtype=jnp.float32)
        b_out = jax.random.uniform(next(k), (output_dim,),
                                   minval=-bound, maxval=bound,
                                   dtype=jnp.float32)
        self.w_out = jnp.pad(w_out.T, ((0, 0), (0, self.v_pad - output_dim)))
        self.b_out = jnp.pad(b_out, (0, self.v_pad - output_dim))[None, :]

    @functools.partial(jax.jit, static_argnums=0)
    def forward(self, tokens, hidden, cell):
        # input.unsqueeze(0) -> seq_len == 1; handled implicitly (single step).
        B = tokens.shape[0]
        Bp = _round_up(max(B, 1), 8)            # sublane-aligned batch
        pad_b = Bp - B

        tok_p = jnp.pad(tokens.astype(jnp.int32), (0, pad_b))[:, None]  # (Bp,1)
        h_p = jnp.pad(hidden, ((0, 0), (0, pad_b), (0, 0)))
        c_p = jnp.pad(cell, ((0, 0), (0, pad_b), (0, 0)))

        pred_p, h_out_p, c_out_p = pl.pallas_call(
            _decoder_step_kernel,
            out_shape=(
                jax.ShapeDtypeStruct((Bp, self.v_pad), jnp.float32),
                jax.ShapeDtypeStruct((self.n_layers, Bp, self.hid_dim),
                                     jnp.float32),
                jax.ShapeDtypeStruct((self.n_layers, Bp, self.hid_dim),
                                     jnp.float32),
            ),
            # hidden/cell state is updated in place (input idx -> output idx).
            input_output_aliases={2: 1, 3: 2},
        )(tok_p, self.embedding, h_p, c_p, self.wih, self.whh, self.b,
          self.w_out, self.b_out)

        # Strip batch / vocab padding before returning (padded state rows must
        # never be fed back as next-step state).
        prediction = pred_p[:B, :self.output_dim]
        hidden_out = h_out_p[:, :B, :]
        cell_out = c_out_p[:, :B, :]
        return prediction, hidden_out, cell_out


# ------------------------------ pure-JAX reference ----------------------------


def reference_decoder_step(dec, tokens, hidden, cell):
    x = dec.embedding[tokens]                          # (B, E)
    new_h, new_c = [], []
    for layer in range(dec.n_layers):
        in_dim = dec.emb_dim if layer == 0 else dec.hid_dim
        h_prev, c_prev = hidden[layer], cell[layer]
        gates = [
            x @ dec.wih[layer, k, :in_dim, :] + h_prev @ dec.whh[layer, k]
            + dec.b[layer, k]
            for k in range(4)
        ]
        i = jax.nn.sigmoid(gates[0])
        f = jax.nn.sigmoid(gates[1])
        g = jnp.tanh(gates[2])
        o = jax.nn.sigmoid(gates[3])
        c_new = f * c_prev + i * g
        h_new = o * jnp.tanh(c_new)
        new_h.append(h_new)
        new_c.append(c_new)
        x = h_new
    pred = x @ dec.w_out[:, :dec.output_dim] + dec.b_out[0, :dec.output_dim]
    return pred, jnp.stack(new_h), jnp.stack(new_c)


# ------------------------------ main ------------------------------------------


if __name__ == "__main__":
    OUTPUT_DIM = 32   # vocab size
    EMB_DIM = 16
    HID_DIM = 32
    N_LAYERS = 2
    DROPOUT = 0.1
    BATCH = 4

    key = jax.random.PRNGKey(0)
    k_params, k_tok, k_h, k_c = jax.random.split(key, 4)

    decoder = DecoderPallas(OUTPUT_DIM, EMB_DIM, HID_DIM, N_LAYERS, DROPOUT,
                            k_params)

    tokens = jax.random.randint(k_tok, (BATCH,), 0, OUTPUT_DIM, dtype=jnp.int32)
    hidden = jax.random.normal(k_h, (N_LAYERS, BATCH, HID_DIM),
                               dtype=jnp.float32)
    cell = jax.random.normal(k_c, (N_LAYERS, BATCH, HID_DIM),
                             dtype=jnp.float32)

    prediction, hidden_out, cell_out = decoder.forward(tokens, hidden, cell)
    jax.block_until_ready((prediction, hidden_out, cell_out))

    assert prediction.shape == (BATCH, OUTPUT_DIM)
    assert hidden_out.shape == (N_LAYERS, BATCH, HID_DIM)
    assert cell_out.shape == (N_LAYERS, BATCH, HID_DIM)

    ref_pred, ref_h, ref_c = reference_decoder_step(decoder, tokens, hidden,
                                                    cell)
    assert np.allclose(np.asarray(prediction), np.asarray(ref_pred),
                       atol=1e-2, rtol=1e-2)
    assert np.allclose(np.asarray(hidden_out), np.asarray(ref_h),
                       atol=1e-2, rtol=1e-2)
    assert np.allclose(np.asarray(cell_out), np.asarray(ref_c),
                       atol=1e-2, rtol=1e-2)

    print("KERNEL_OK")
</pallas_src>

<mosaic_0001>
module attributes {stable_mosaic.version = 11 : i64} {
  func.func @_decoder_step_kernel(%arg0: memref<8x1xi32, #tpu.memory_space<vmem>>, %arg1: memref<32x16xf32, #tpu.memory_space<vmem>>, %arg2: memref<2x8x32xf32, #tpu.memory_space<vmem>>, %arg3: memref<2x8x32xf32, #tpu.memory_space<vmem>>, %arg4: memref<2x4x32x32xf32, #tpu.memory_space<vmem>>, %arg5: memref<2x4x32x32xf32, #tpu.memory_space<vmem>>, %arg6: memref<2x4x1x32xf32, #tpu.memory_space<vmem>>, %arg7: memref<32x128xf32, #tpu.memory_space<vmem>>, %arg8: memref<1x128xf32, #tpu.memory_space<vmem>>, %arg9: memref<8x128xf32, #tpu.memory_space<vmem>>, %arg10: memref<2x8x32xf32, #tpu.memory_space<vmem>>, %arg11: memref<2x8x32xf32, #tpu.memory_space<vmem>>) attributes {dimension_semantics = [], scalar_prefetch = 0 : i64, scratch_operands = 0 : i64, tpu.core_type = #tpu.core_type<tc>} {
    %c0 = arith.constant 0 : index
    %c0_0 = arith.constant 0 : index
    %0 = vector.load %arg0[%c0, %c0_0] : memref<8x1xi32, #tpu.memory_space<vmem>>, vector<8x1xi32>
    %1 = tpu.iota {dimensions = array<i32: 1>} : vector<8x32xi32>
    %2 = vector.broadcast %0 : vector<8x1xi32> to vector<8x32xi32>
    %3 = arith.cmpi eq, %1, %2 : vector<8x32xi32>
    %4 = arith.extui %3 : vector<8x32xi1> to vector<8x32xi32>
    %5 = arith.sitofp %4 : vector<8x32xi32> to vector<8x32xf32>
    %c0_1 = arith.constant 0 : index
    %c0_2 = arith.constant 0 : index
    %6 = vector.load %arg1[%c0_1, %c0_2] : memref<32x16xf32, #tpu.memory_space<vmem>>, vector<32x16xf32>
    %cst = arith.constant dense<0.000000e+00> : vector<8x16xf32>
    %7 = tpu.matmul %5, %6, %cst {dimension_numbers = #tpu.dot_dimension_numbers<[1], [0], [0], [1], [0, 0, 1, 1], [], []>} : vector<8x32xf32>, vector<32x16xf32>, vector<8x16xf32> -> vector<8x16xf32>
    %cst_3 = arith.constant 0.000000e+00 : f32
    %8 = vector.broadcast %cst_3 : f32 to vector<8x16xf32>
    %9 = tpu.concatenate %7, %8 in 1 : vector<8x16xf32>, vector<8x16xf32> -> vector<8x32xf32>
    %c0_4 = arith.constant 0 : index
    %c0_5 = arith.constant 0 : index
    %c0_6 = arith.constant 0 : index
    %10 = vector.load %arg2[%c0_4, %c0_5, %c0_6] : memref<2x8x32xf32, #tpu.memory_space<vmem>>, vector<1x8x32xf32>
    %11 = vector.shape_cast %10 : vector<1x8x32xf32> to vector<8x32xf32>
    %c0_7 = arith.constant 0 : index
    %c0_8 = arith.constant 0 : index
    %c0_9 = arith.constant 0 : index
    %12 = vector.load %arg3[%c0_7, %c0_8, %c0_9] : memref<2x8x32xf32, #tpu.memory_space<vmem>>, vector<1x8x32xf32>
    %13 = vector.shape_cast %12 : vector<1x8x32xf32> to vector<8x32xf32>
    %c0_10 = arith.constant 0 : index
    %c0_11 = arith.constant 0 : index
    %c0_12 = arith.constant 0 : index
    %c0_13 = arith.constant 0 : index
    %14 = vector.load %arg4[%c0_10, %c0_11, %c0_12, %c0_13] : memref<2x4x32x32xf32, #tpu.memory_space<vmem>>, vector<1x1x32x32xf32>
    %15 = vector.shape_cast %14 : vector<1x1x32x32xf32> to vector<32x32xf32>
    %cst_14 = arith.constant dense<0.000000e+00> : vector<8x32xf32>
    %16 = tpu.matmul %9, %15, %cst_14 {dimension_numbers = #tpu.dot_dimension_numbers<[1], [0], [0], [1], [0, 0, 1, 1], [], []>} : vector<8x32xf32>, vector<32x32xf32>, vector<8x32xf32> -> vector<8x32xf32>
    %c0_15 = arith.constant 0 : index
    %c0_16 = arith.constant 0 : index
    %c0_17 = arith.constant 0 : index
    %c0_18 = arith.constant 0 : index
    %17 = vector.load %arg5[%c0_15, %c0_16, %c0_17, %c0_18] : memref<2x4x32x32xf32, #tpu.memory_space<vmem>>, vector<1x1x32x32xf32>
    %18 = vector.shape_cast %17 : vector<1x1x32x32xf32> to vector<32x32xf32>
    %cst_19 = arith.constant dense<0.000000e+00> : vector<8x32xf32>
    %19 = tpu.matmul %11, %18, %cst_19 {dimension_numbers = #tpu.dot_dimension_numbers<[1], [0], [0], [1], [0, 0, 1, 1], [], []>} : vector<8x32xf32>, vector<32x32xf32>, vector<8x32xf32> -> vector<8x32xf32>
    %20 = arith.addf %16, %19 : vector<8x32xf32>
    %c0_20 = arith.constant 0 : index
    %c0_21 = arith.constant 0 : index
    %c0_22 = arith.constant 0 : index
    %c0_23 = arith.constant 0 : index
    %21 = vector.load %arg6[%c0_20, %c0_21, %c0_22, %c0_23] : memref<2x4x1x32xf32, #tpu.memory_space<vmem>>, vector<1x1x1x32xf32>
    %22 = vector.shape_cast %21 : vector<1x1x1x32xf32> to vector<1x32xf32>
    %23 = vector.broadcast %22 : vector<1x32xf32> to vector<8x32xf32>
    %24 = arith.addf %20, %23 : vector<8x32xf32>
    %c0_24 = arith.constant 0 : index
    %c1 = arith.constant 1 : index
    %c0_25 = arith.constant 0 : index
    %c0_26 = arith.constant 0 : index
    %25 = vector.load %arg4[%c0_24, %c1, %c0_25, %c0_26] : memref<2x4x32x32xf32, #tpu.memory_space<vmem>>, vector<1x1x32x32xf32>
    %26 = vector.shape_cast %25 : vector<1x1x32x32xf32> to vector<32x32xf32>
    %cst_27 = arith.constant dense<0.000000e+00> : vector<8x32xf32>
    %27 = tpu.matmul %9, %26, %cst_27 {dimension_numbers = #tpu.dot_dimension_numbers<[1], [0], [0], [1], [0, 0, 1, 1], [], []>} : vector<8x32xf32>, vector<32x32xf32>, vector<8x32xf32> -> vector<8x32xf32>
    %c0_28 = arith.constant 0 : index
    %c1_29 = arith.constant 1 : index
    %c0_30 = arith.constant 0 : index
    %c0_31 = arith.constant 0 : index
    %28 = vector.load %arg5[%c0_28, %c1_29, %c0_30, %c0_31] : memref<2x4x32x32xf32, #tpu.memory_space<vmem>>, vector<1x1x32x32xf32>
    %29 = vector.shape_cast %28 : vector<1x1x32x32xf32> to vector<32x32xf32>
    %cst_32 = arith.constant dense<0.000000e+00> : vector<8x32xf32>
    %30 = tpu.matmul %11, %29, %cst_32 {dimension_numbers = #tpu.dot_dimension_numbers<[1], [0], [0], [1], [0, 0, 1, 1], [], []>} : vector<8x32xf32>, vector<32x32xf32>, vector<8x32xf32> -> vector<8x32xf32>
    %31 = arith.addf %27, %30 : vector<8x32xf32>
    %c0_33 = arith.constant 0 : index
    %c1_34 = arith.constant 1 : index
    %c0_35 = arith.constant 0 : index
    %c0_36 = arith.constant 0 : index
    %32 = vector.load %arg6[%c0_33, %c1_34, %c0_35, %c0_36] : memref<2x4x1x32xf32, #tpu.memory_space<vmem>>, vector<1x1x1x32xf32>
    %33 = vector.shape_cast %32 : vector<1x1x1x32xf32> to vector<1x32xf32>
    %34 = vector.broadcast %33 : vector<1x32xf32> to vector<8x32xf32>
    %35 = arith.addf %31, %34 : vector<8x32xf32>
    %c0_37 = arith.constant 0 : index
    %c2 = arith.constant 2 : index
    %c0_38 = arith.constant 0 : index
    %c0_39 = arith.constant 0 : index
    %36 = vector.load %arg4[%c0_37, %c2, %c0_38, %c0_39] : memref<2x4x32x32xf32, #tpu.memory_space<vmem>>, vector<1x1x32x32xf32>
    %37 = vector.shape_cast %36 : vector<1x1x32x32xf32> to vector<32x32xf32>
    %cst_40 = arith.constant dense<0.000000e+00> : vector<8x32xf32>
    %38 = tpu.matmul %9, %37, %cst_40 {dimension_numbers = #tpu.dot_dimension_numbers<[1], [0], [0], [1], [0, 0, 1, 1], [], []>} : vector<8x32xf32>, vector<32x32xf32>, vector<8x32xf32> -> vector<8x32xf32>
    %c0_41 = arith.constant 0 : index
    %c2_42 = arith.constant 2 : index
    %c0_43 = arith.constant 0 : index
    %c0_44 = arith.constant 0 : index
    %39 = vector.load %arg5[%c0_41, %c2_42, %c0_43, %c0_44] : memref<2x4x32x32xf32, #tpu.memory_space<vmem>>, vector<1x1x32x32xf32>
    %40 = vector.shape_cast %39 : vector<1x1x32x32xf32> to vector<32x32xf32>
    %cst_45 = arith.constant dense<0.000000e+00> : vector<8x32xf32>
    %41 = tpu.matmul %11, %40, %cst_45 {dimension_numbers = #tpu.dot_dimension_numbers<[1], [0], [0], [1], [0, 0, 1, 1], [], []>} : vector<8x32xf32>, vector<32x32xf32>, vector<8x32xf32> -> vector<8x32xf32>
    %42 = arith.addf %38, %41 : vector<8x32xf32>
    %c0_46 = arith.constant 0 : index
    %c2_47 = arith.constant 2 : index
    %c0_48 = arith.constant 0 : index
    %c0_49 = arith.constant 0 : index
    %43 = vector.load %arg6[%c0_46, %c2_47, %c0_48, %c0_49] : memref<2x4x1x32xf32, #tpu.memory_space<vmem>>, vector<1x1x1x32xf32>
    %44 = vector.shape_cast %43 : vector<1x1x1x32xf32> to vector<1x32xf32>
    %45 = vector.broadcast %44 : vector<1x32xf32> to vector<8x32xf32>
    %46 = arith.addf %42, %45 : vector<8x32xf32>
    %c0_50 = arith.constant 0 : index
    %c3 = arith.constant 3 : index
    %c0_51 = arith.constant 0 : index
    %c0_52 = arith.constant 0 : index
    %47 = vector.load %arg4[%c0_50, %c3, %c0_51, %c0_52] : memref<2x4x32x32xf32, #tpu.memory_space<vmem>>, vector<1x1x32x32xf32>
    %48 = vector.shape_cast %47 : vector<1x1x32x32xf32> to vector<32x32xf32>
    %cst_53 = arith.constant dense<0.000000e+00> : vector<8x32xf32>
    %49 = tpu.matmul %9, %48, %cst_53 {dimension_numbers = #tpu.dot_dimension_numbers<[1], [0], [0], [1], [0, 0, 1, 1], [], []>} : vector<8x32xf32>, vector<32x32xf32>, vector<8x32xf32> -> vector<8x32xf32>
    %c0_54 = arith.constant 0 : index
    %c3_55 = arith.constant 3 : index
    %c0_56 = arith.constant 0 : index
    %c0_57 = arith.constant 0 : index
    %50 = vector.load %arg5[%c0_54, %c3_55, %c0_56, %c0_57] : memref<2x4x32x32xf32, #tpu.memory_space<vmem>>, vector<1x1x32x32xf32>
    %51 = vector.shape_cast %50 : vector<1x1x32x32xf32> to vector<32x32xf32>
    %cst_58 = arith.constant dense<0.000000e+00> : vector<8x32xf32>
    %52 = tpu.matmul %11, %51, %cst_58 {dimension_numbers = #tpu.dot_dimension_numbers<[1], [0], [0], [1], [0, 0, 1, 1], [], []>} : vector<8x32xf32>, vector<32x32xf32>, vector<8x32xf32> -> vector<8x32xf32>
    %53 = arith.addf %49, %52 : vector<8x32xf32>
    %c0_59 = arith.constant 0 : index
    %c3_60 = arith.constant 3 : index
    %c0_61 = arith.constant 0 : index
    %c0_62 = arith.constant 0 : index
    %54 = vector.load %arg6[%c0_59, %c3_60, %c0_61, %c0_62] : memref<2x4x1x32xf32, #tpu.memory_space<vmem>>, vector<1x1x1x32xf32>
    %55 = vector.shape_cast %54 : vector<1x1x1x32xf32> to vector<1x32xf32>
    %56 = vector.broadcast %55 : vector<1x32xf32> to vector<8x32xf32>
    %57 = arith.addf %53, %56 : vector<8x32xf32>
    %58 = arith.negf %24 : vector<8x32xf32>
    %59 = math.exp %58 : vector<8x32xf32>
    %cst_63 = arith.constant 1.000000e+00 : f32
    %60 = vector.broadcast %cst_63 : f32 to vector<8x32xf32>
    %61 = arith.addf %60, %59 : vector<8x32xf32>
    %62 = arith.divf %60, %61 : vector<8x32xf32>
    %63 = arith.negf %35 : vector<8x32xf32>
    %64 = math.exp %63 : vector<8x32xf32>
    %cst_64 = arith.constant 1.000000e+00 : f32
    %65 = vector.broadcast %cst_64 : f32 to vector<8x32xf32>
    %66 = arith.addf %65, %64 : vector<8x32xf32>
    %67 = arith.divf %65, %66 : vector<8x32xf32>
    %68 = math.tanh %46 : vector<8x32xf32>
    %69 = arith.negf %57 : vector<8x32xf32>
    %70 = math.exp %69 : vector<8x32xf32>
    %cst_65 = arith.constant 1.000000e+00 : f32
    %71 = vector.broadcast %cst_65 : f32 to vector<8x32xf32>
    %72 = arith.addf %71, %70 : vector<8x32xf32>
    %73 = arith.divf %71, %72 : vector<8x32xf32>
    %74 = arith.mulf %67, %13 : vector<8x32xf32>
    %75 = arith.mulf %62, %68 : vector<8x32xf32>
    %76 = arith.addf %74, %75 : vector<8x32xf32>
    %77 = math.tanh %76 : vector<8x32xf32>
    %78 = arith.mulf %73, %77 : vector<8x32xf32>
    %c0_66 = arith.constant 0 : index
    %c0_67 = arith.constant 0 : index
    %c0_68 = arith.constant 0 : index
    %79 = vector.load %arg10[%c0_66, %c0_67, %c0_68] : memref<2x8x32xf32, #tpu.memory_space<vmem>>, vector<1x8x32xf32>
    %80 = vector.shape_cast %79 : vector<1x8x32xf32> to vector<8x32xf32>
    %81 = vector.shape_cast %78 : vector<8x32xf32> to vector<1x8x32xf32>
    tpu.vector_store %arg10[%c0_66, %c0_67, %c0_68], %81 {strides = array<i32>} : memref<2x8x32xf32, #tpu.memory_space<vmem>>, vector<1x8x32xf32>,
    %c0_69 = arith.constant 0 : index
    %c0_70 = arith.constant 0 : index
    %c0_71 = arith.constant 0 : index
    %82 = vector.load %arg11[%c0_69, %c0_70, %c0_71] : memref<2x8x32xf32, #tpu.memory_space<vmem>>, vector<1x8x32xf32>
    %83 = vector.shape_cast %82 : vector<1x8x32xf32> to vector<8x32xf32>
    %84 = vector.shape_cast %76 : vector<8x32xf32> to vector<1x8x32xf32>
    tpu.vector_store %arg11[%c0_69, %c0_70, %c0_71], %84 {strides = array<i32>} : memref<2x8x32xf32, #tpu.memory_space<vmem>>, vector<1x8x32xf32>,
    %c1_72 = arith.constant 1 : index
    %c0_73 = arith.constant 0 : index
    %c0_74 = arith.constant 0 : index
    %85 = vector.load %arg2[%c1_72, %c0_73, %c0_74] : memref<2x8x32xf32, #tpu.memory_space<vmem>>, vector<1x8x32xf32>
    %86 = vector.shape_cast %85 : vector<1x8x32xf32> to vector<8x32xf32>
    %c1_75 = arith.constant 1 : index
    %c0_76 = arith.constant 0 : index
    %c0_77 = arith.constant 0 : index
    %87 = vector.load %arg3[%c1_75, %c0_76, %c0_77] : memref<2x8x32xf32, #tpu.memory_space<vmem>>, vector<1x8x32xf32>
    %88 = vector.shape_cast %87 : vector<1x8x32xf32> to vector<8x32xf32>
    %c1_78 = arith.constant 1 : index
    %c0_79 = arith.constant 0 : index
    %c0_80 = arith.constant 0 : index
    %c0_81 = arith.constant 0 : index
    %89 = vector.load %arg4[%c1_78, %c0_79, %c0_80, %c0_81] : memref<2x4x32x32xf32, #tpu.memory_space<vmem>>, vector<1x1x32x32xf32>
    %90 = vector.shape_cast %89 : vector<1x1x32x32xf32> to vector<32x32xf32>
    %cst_82 = arith.constant dense<0.000000e+00> : vector<8x32xf32>
    %91 = tpu.matmul %78, %90, %cst_82 {dimension_numbers = #tpu.dot_dimension_numbers<[1], [0], [0], [1], [0, 0, 1, 1], [], []>} : vector<8x32xf32>, vector<32x32xf32>, vector<8x32xf32> -> vector<8x32xf32>
    %c1_83 = arith.constant 1 : index
    %c0_84 = arith.constant 0 : index
    %c0_85 = arith.constant 0 : index
    %c0_86 = arith.constant 0 : index
    %92 = vector.load %arg5[%c1_83, %c0_84, %c0_85, %c0_86] : memref<2x4x32x32xf32, #tpu.memory_space<vmem>>, vector<1x1x32x32xf32>
    %93 = vector.shape_cast %92 : vector<1x1x32x32xf32> to vector<32x32xf32>
    %cst_87 = arith.constant dense<0.000000e+00> : vector<8x32xf32>
    %94 = tpu.matmul %86, %93, %cst_87 {dimension_numbers = #tpu.dot_dimension_numbers<[1], [0], [0], [1], [0, 0, 1, 1], [], []>} : vector<8x32xf32>, vector<32x32xf32>, vector<8x32xf32> -> vector<8x32xf32>
    %95 = arith.addf %91, %94 : vector<8x32xf32>
    %c1_88 = arith.constant 1 : index
    %c0_89 = arith.constant 0 : index
    %c0_90 = arith.constant 0 : index
    %c0_91 = arith.constant 0 : index
    %96 = vector.load %arg6[%c1_88, %c0_89, %c0_90, %c0_91] : memref<2x4x1x32xf32, #tpu.memory_space<vmem>>, vector<1x1x1x32xf32>
    %97 = vector.shape_cast %96 : vector<1x1x1x32xf32> to vector<1x32xf32>
    %98 = vector.broadcast %97 : vector<1x32xf32> to vector<8x32xf32>
    %99 = arith.addf %95, %98 : vector<8x32xf32>
    %c1_92 = arith.constant 1 : index
    %c1_93 = arith.constant 1 : index
    %c0_94 = arith.constant 0 : index
    %c0_95 = arith.constant 0 : index
    %100 = vector.load %arg4[%c1_92, %c1_93, %c0_94, %c0_95] : memref<2x4x32x32xf32, #tpu.memory_space<vmem>>, vector<1x1x32x32xf32>
    %101 = vector.shape_cast %100 : vector<1x1x32x32xf32> to vector<32x32xf32>
    %cst_96 = arith.constant dense<0.000000e+00> : vector<8x32xf32>
    %102 = tpu.matmul %78, %101, %cst_96 {dimension_numbers = #tpu.dot_dimension_numbers<[1], [0], [0], [1], [0, 0, 1, 1], [], []>} : vector<8x32xf32>, vector<32x32xf32>, vector<8x32xf32> -> vector<8x32xf32>
    %c1_97 = arith.constant 1 : index
    %c1_98 = arith.constant 1 : index
    %c0_99 = arith.constant 0 : index
    %c0_100 = arith.constant 0 : index
    %103 = vector.load %arg5[%c1_97, %c1_98, %c0_99, %c0_100] : memref<2x4x32x32xf32, #tpu.memory_space<vmem>>, vector<1x1x32x32xf32>
    %104 = vector.shape_cast %103 : vector<1x1x32x32xf32> to vector<32x32xf32>
    %cst_101 = arith.constant dense<0.000000e+00> : vector<8x32xf32>
    %105 = tpu.matmul %86, %104, %cst_101 {dimension_numbers = #tpu.dot_dimension_numbers<[1], [0], [0], [1], [0, 0, 1, 1], [], []>} : vector<8x32xf32>, vector<32x32xf32>, vector<8x32xf32> -> vector<8x32xf32>
    %106 = arith.addf %102, %105 : vector<8x32xf32>
    %c1_102 = arith.constant 1 : index
    %c1_103 = arith.constant 1 : index
    %c0_104 = arith.constant 0 : index
    %c0_105 = arith.constant 0 : index
    %107 = vector.load %arg6[%c1_102, %c1_103, %c0_104, %c0_105] : memref<2x4x1x32xf32, #tpu.memory_space<vmem>>, vector<1x1x1x32xf32>
    %108 = vector.shape_cast %107 : vector<1x1x1x32xf32> to vector<1x32xf32>
    %109 = vector.broadcast %108 : vector<1x32xf32> to vector<8x32xf32>
    %110 = arith.addf %106, %109 : vector<8x32xf32>
    %c1_106 = arith.constant 1 : index
    %c2_107 = arith.constant 2 : index
    %c0_108 = arith.constant 0 : index
    %c0_109 = arith.constant 0 : index
    %111 = vector.load %arg4[%c1_106, %c2_107, %c0_108, %c0_109] : memref<2x4x32x32xf32, #tpu.memory_space<vmem>>, vector<1x1x32x32xf32>
    %112 = vector.shape_cast %111 : vector<1x1x32x32xf32> to vector<32x32xf32>
    %cst_110 = arith.constant dense<0.000000e+00> : vector<8x32xf32>
    %113 = tpu.matmul %78, %112, %cst_110 {dimension_numbers = #tpu.dot_dimension_numbers<[1], [0], [0], [1], [0, 0, 1, 1], [], []>} : vector<8x32xf32>, vector<32x32xf32>, vector<8x32xf32> -> vector<8x32xf32>
    %c1_111 = arith.constant 1 : index
    %c2_112 = arith.constant 2 : index
    %c0_113 = arith.constant 0 : index
    %c0_114 = arith.constant 0 : index
    %114 = vector.load %arg5[%c1_111, %c2_112, %c0_113, %c0_114] : memref<2x4x32x32xf32, #tpu.memory_space<vmem>>, vector<1x1x32x32xf32>
    %115 = vector.shape_cast %114 : vector<1x1x32x32xf32> to vector<32x32xf32>
    %cst_115 = arith.constant dense<0.000000e+00> : vector<8x32xf32>
    %116 = tpu.matmul %86, %115, %cst_115 {dimension_numbers = #tpu.dot_dimension_numbers<[1], [0], [0], [1], [0, 0, 1, 1], [], []>} : vector<8x32xf32>, vector<32x32xf32>, vector<8x32xf32> -> vector<8x32xf32>
    %117 = arith.addf %113, %116 : vector<8x32xf32>
    %c1_116 = arith.constant 1 : index
    %c2_117 = arith.constant 2 : index
    %c0_118 = arith.constant 0 : index
    %c0_119 = arith.constant 0 : index
    %118 = vector.load %arg6[%c1_116, %c2_117, %c0_118, %c0_119] : memref<2x4x1x32xf32, #tpu.memory_space<vmem>>, vector<1x1x1x32xf32>
    %119 = vector.shape_cast %118 : vector<1x1x1x32xf32> to vector<1x32xf32>
    %120 = vector.broadcast %119 : vector<1x32xf32> to vector<8x32xf32>
    %121 = arith.addf %117, %120 : vector<8x32xf32>
    %c1_120 = arith.constant 1 : index
    %c3_121 = arith.constant 3 : index
    %c0_122 = arith.constant 0 : index
    %c0_123 = arith.constant 0 : index
    %122 = vector.load %arg4[%c1_120, %c3_121, %c0_122, %c0_123] : memref<2x4x32x32xf32, #tpu.memory_space<vmem>>, vector<1x1x32x32xf32>
    %123 = vector.shape_cast %122 : vector<1x1x32x32xf32> to vector<32x32xf32>
    %cst_124 = arith.constant dense<0.000000e+00> : vector<8x32xf32>
    %124 = tpu.matmul %78, %123, %cst_124 {dimension_numbers = #tpu.dot_dimension_numbers<[1], [0], [0], [1], [0, 0, 1, 1], [], []>} : vector<8x32xf32>, vector<32x32xf32>, vector<8x32xf32> -> vector<8x32xf32>
    %c1_125 = arith.constant 1 : index
    %c3_126 = arith.constant 3 : index
    %c0_127 = arith.constant 0 : index
    %c0_128 = arith.constant 0 : index
    %125 = vector.load %arg5[%c1_125, %c3_126, %c0_127, %c0_128] : memref<2x4x32x32xf32, #tpu.memory_space<vmem>>, vector<1x1x32x32xf32>
    %126 = vector.shape_cast %125 : vector<1x1x32x32xf32> to vector<32x32xf32>
    %cst_129 = arith.constant dense<0.000000e+00> : vector<8x32xf32>
    %127 = tpu.matmul %86, %126, %cst_129 {dimension_numbers = #tpu.dot_dimension_numbers<[1], [0], [0], [1], [0, 0, 1, 1], [], []>} : vector<8x32xf32>, vector<32x32xf32>, vector<8x32xf32> -> vector<8x32xf32>
    %128 = arith.addf %124, %127 : vector<8x32xf32>
    %c1_130 = arith.constant 1 : index
    %c3_131 = arith.constant 3 : index
    %c0_132 = arith.constant 0 : index
    %c0_133 = arith.constant 0 : index
    %129 = vector.load %arg6[%c1_130, %c3_131, %c0_132, %c0_133] : memref<2x4x1x32xf32, #tpu.memory_space<vmem>>, vector<1x1x1x32xf32>
    %130 = vector.shape_cast %129 : vector<1x1x1x32xf32> to vector<1x32xf32>
    %131 = vector.broadcast %130 : vector<1x32xf32> to vector<8x32xf32>
    %132 = arith.addf %128, %131 : vector<8x32xf32>
    %133 = arith.negf %99 : vector<8x32xf32>
    %134 = math.exp %133 : vector<8x32xf32>
    %cst_134 = arith.constant 1.000000e+00 : f32
    %135 = vector.broadcast %cst_134 : f32 to vector<8x32xf32>
    %136 = arith.addf %135, %134 : vector<8x32xf32>
    %137 = arith.divf %135, %136 : vector<8x32xf32>
    %138 = arith.negf %110 : vector<8x32xf32>
    %139 = math.exp %138 : vector<8x32xf32>
    %cst_135 = arith.constant 1.000000e+00 : f32
    %140 = vector.broadcast %cst_135 : f32 to vector<8x32xf32>
    %141 = arith.addf %140, %139 : vector<8x32xf32>
    %142 = arith.divf %140, %141 : vector<8x32xf32>
    %143 = math.tanh %121 : vector<8x32xf32>
    %144 = arith.negf %132 : vector<8x32xf32>
    %145 = math.exp %144 : vector<8x32xf32>
    %cst_136 = arith.constant 1.000000e+00 : f32
    %146 = vector.broadcast %cst_136 : f32 to vector<8x32xf32>
    %147 = arith.addf %146, %145 : vector<8x32xf32>
    %148 = arith.divf %146, %147 : vector<8x32xf32>
    %149 = arith.mulf %142, %88 : vector<8x32xf32>
    %150 = arith.mulf %137, %143 : vector<8x32xf32>
    %151 = arith.addf %149, %150 : vector<8x32xf32>
    %152 = math.tanh %151 : vector<8x32xf32>
    %153 = arith.mulf %148, %152 : vector<8x32xf32>
    %c1_137 = arith.constant 1 : index
    %c0_138 = arith.constant 0 : index
    %c0_139 = arith.constant 0 : index
    %154 = vector.load %arg10[%c1_137, %c0_138, %c0_139] : memref<2x8x32xf32, #tpu.memory_space<vmem>>, vector<1x8x32xf32>
    %155 = vector.shape_cast %154 : vector<1x8x32xf32> to vector<8x32xf32>
    %156 = vector.shape_cast %153 : vector<8x32xf32> to vector<1x8x32xf32>
    tpu.vector_store %arg10[%c1_137, %c0_138, %c0_139], %156 {strides = array<i32>} : memref<2x8x32xf32, #tpu.memory_space<vmem>>, vector<1x8x32xf32>,
    %c1_140 = arith.constant 1 : index
    %c0_141 = arith.constant 0 : index
    %c0_142 = arith.constant 0 : index
    %157 = vector.load %arg11[%c1_140, %c0_141, %c0_142] : memref<2x8x32xf32, #tpu.memory_space<vmem>>, vector<1x8x32xf32>
    %158 = vector.shape_cast %157 : vector<1x8x32xf32> to vector<8x32xf32>
    %159 = vector.shape_cast %151 : vector<8x32xf32> to vector<1x8x32xf32>
    tpu.vector_store %arg11[%c1_140, %c0_141, %c0_142], %159 {strides = array<i32>} : memref<2x8x32xf32, #tpu.memory_space<vmem>>, vector<1x8x32xf32>,
    %c0_143 = arith.constant 0 : index
    %c0_144 = arith.constant 0 : index
    %160 = vector.load %arg7[%c0_143, %c0_144] : memref<32x128xf32, #tpu.memory_space<vmem>>, vector<32x128xf32>
    %cst_145 = arith.constant dense<0.000000e+00> : vector<8x128xf32>
    %161 = tpu.matmul %153, %160, %cst_145 {dimension_numbers = #tpu.dot_dimension_numbers<[1], [0], [0], [1], [0, 0, 1, 1], [], []>} : vector<8x32xf32>, vector<32x128xf32>, vector<8x128xf32> -> vector<8x128xf32>
    %c0_146 = arith.constant 0 : index
    %c0_147 = arith.constant 0 : index
    %162 = vector.load %arg8[%c0_146, %c0_147] : memref<1x128xf32, #tpu.memory_space<vmem>>, vector<1x128xf32>
    %163 = vector.broadcast %162 : vector<1x128xf32> to vector<8x128xf32>
    %164 = arith.addf %161, %163 : vector<8x128xf32>
    %c0_148 = arith.constant 0 : index
    %c0_149 = arith.constant 0 : index
    %165 = vector.load %arg9[%c0_148, %c0_149] : memref<8x128xf32, #tpu.memory_space<vmem>>, vector<8x128xf32>
    tpu.vector_store %arg9[%c0_148, %c0_149], %164 {strides = array<i32>} : memref<8x128xf32, #tpu.memory_space<vmem>>, vector<8x128xf32>,
    return
  }
}

</mosaic_0001>

<bundles_post_ra>
// kernel: forward.1
= control target key start
LH: loop header
LB: loop body
LE: loop exit
PB: predicated region body
PF: predicated region fallthrough
CT: control target
= control target key end

     0   :  { %17 = vsyncpa [#allocation3], 0  ;;  %s2402_s0 = inlined_call_operand.vmem [shape: s32[8,1], index: 0, kind: input, shape index: {}]   ;;  %s2403_s1 = inlined_call_operand.vmem [shape: f32[32,16], index: 1, kind: input, shape index: {}]   ;;  %s2404_s2 = inlined_call_operand.vmem [shape: f32[2,8,32], index: 2, kind: input, shape index: {}, may-alias: {2,10}]   ;;  %s2405_s3 = inlined_call_operand.vmem [shape: f32[2,8,32], index: 3, kind: input, shape index: {}, may-alias: {3,11}]   ;;  %s2406_s4 = inlined_call_operand.hbm [shape: f32[2,4,32,32], index: 4, kind: input, shape index: {}]   ;;  %s2407_s5 = inlined_call_operand.hbm [shape: f32[2,4,32,32], index: 5, kind: input, shape index: {}]   ;;  %s2408_s6 = inlined_call_operand.vmem [shape: f32[2,4,1,32], index: 6, kind: input, shape index: {}]   ;;  %s2409_s7 = inlined_call_operand.vmem [shape: f32[32,128], index: 7, kind: input, shape index: {}]   ;;  %s2410_s8 = inlined_call_operand.vmem [shape: f32[1,128], index: 8, kind: input, shape index: {}]   ;;  %s2411_s9 = inlined_call_operand.vmem [shape: f32[8,128], index: 9, kind: output, shape index: {0}]   ;;  %s2412_s10 = inlined_call_operand.vmem [shape: f32[2,8,32], index: 10, kind: output, shape index: {1}, may-alias: {2,10}]   ;;  %s2413_s11 = inlined_call_operand.vmem [shape: f32[2,8,32], index: 11, kind: output, shape index: {2}, may-alias: {3,11}]  }
   0x1   :  { %18 = vsyncpa [#allocation5], 0  ;;  %s2122_s17 = smov [#allocation2]   ;;  %s2074_s21 = scalar_lea.hbm %s2406_s4, 4096 }
   0x2   :  { %s32_s18 = sshll.u32 %s2122_s17, 4  ;;  %p2075_p0 = scmp.ne.s32.totalorder %s2406_s4, %s2074_s21  ;;  %s33_s18 = int_to_ptr.vmem [resolvable:$true] %s32_s18 }
   0x3   :  { %p2078_p1 = scmp.lt.u32.totalorder %s2074_s21, %s2406_s4 }
   0x5   :  { %p2080_p2 = pnand %p2078_p1, %p2075_p0 }
   0x7   :  { %2083 = shalt.err (!%p2080_p2)
}
   0x8   :  { %s2084_s26 = scalar_lea.vmem %s33_s18, 4096  ;;  %p2089_p4 = scmp.lt.s32.totalorder %s33_s18, %s33_s18 }
   0x9   :  { %p2085_p3 = scmp.ne.s32.totalorder %s33_s18, %s2084_s26  ;;  %p2090_p5 = scmp.lt.s32.totalorder %s2084_s26, %s2084_s26 }
   0xb   :  { %p2091_p6 = por %p2090_p5, %p2089_p4 }
   0xd   :  { %p2092_p7 = pnand %p2091_p6, %p2085_p3 }
   0xf   :  { %2095 = shalt.err (!%p2092_p7)
}
  0x10   :  { %s2123_s27 = smov 128   ;;  %s2124_s28 = smov 8  }
  0x11   :  { %38 = dma.hbm_to_vmem [thread:$0]  %s2406_s4, 4096, %s33_s18, [#allocation3], %s2123_s27, %s2123_s27, %s2124_s28  }
  0x12   :  { %s2125_s12 = smov [#allocation4]   ;;  %s2096_s16 = scalar_lea.hbm %s2407_s5, 4096 }
  0x13   :  { %s44_s13 = sshll.u32 %s2125_s12, 4  ;;  %p2097_p8 = scmp.ne.s32.totalorder %s2407_s5, %s2096_s16  ;;  %s45_s13 = int_to_ptr.vmem [resolvable:$true] %s44_s13 }
  0x14   :  { %p2100_p9 = scmp.lt.u32.totalorder %s2096_s16, %s2407_s5 }
  0x16   :  { %p2102_p10 = pnand %p2100_p9, %p2097_p8 }
  0x18   :  { %2105 = shalt.err (!%p2102_p10)
}
  0x19   :  { %s2106_s22 = scalar_lea.vmem %s45_s13, 4096  ;;  %p2111_p12 = scmp.lt.s32.totalorder %s45_s13, %s45_s13 }
  0x1a   :  { %p2107_p11 = scmp.ne.s32.totalorder %s45_s13, %s2106_s22  ;;  %p2112_p13 = scmp.lt.s32.totalorder %s2106_s22, %s2106_s22 }
  0x1c   :  { %p2113_p0 = por %p2112_p13, %p2111_p12 }
  0x1e   :  { %p2114_p1 = pnand %p2113_p0, %p2107_p11 }
  0x20   :  { %2117 = shalt.err (!%p2114_p1)
}
  0x21   :  { %50 = dma.hbm_to_vmem [thread:$0]  %s2407_s5, 4096, %s45_s13, [#allocation5], %s2123_s27, %s2123_s27, %s2124_s28  }
  0x22   :  { %2118 = dma.done.wait [#allocation3], 4096  }
  0x23   :  { %2119 = vsyncadd [#allocation3], 4294963200 }
  0x24   :  { %2120 = dma.done.wait [#allocation5], 4096  }
  0x25   :  { %2121 = vsyncadd [#allocation5], 4294963200  ;;  %v2126_v0 = vmov 0   ;;  %v2127_v1 = vmov 0.0|0.0   ;;  %v63_v2 = vld [vmem:[%s2402_s0] sm:$0xff]  ;;  %v73_v4 = vld [vmem:[%s2403_s1 + $0x8] sm:$0xff]  ;;  %v64_v16 = vlaneseq }
  0x26   :  { %2041 = vset.pattern.permute.xlu0 %v2126_v0  ;;  %1925 = vmatprep.subr.bf16.mxu0 %v2127_v1  ;;  %v72_v3 = vld [vmem:[%s2403_s1] sm:$0xff]  ;;  %v74_v6 = vld [vmem:[%s2403_s1 + $0x10] sm:$0xff]  ;;  %v75_v7 = vld [vmem:[%s2403_s1 + $0x18] sm:$0xff]  ;;  %vm2128_vm0 = vmmov 0   ;;  %v2129_v8 = vmov 0.0   ;;  %vm76_vm1 = vcmask 261120  }
  0x27   :  { %1931 = vmatprep.subr.bf16.mxu1 %v2127_v1  ;;  %67 = vperm.xlu0 %2041, %v63_v2   ;;  %v1926_v5 = vpack.c.bf16 %v73_v4, %v72_v3  ;;  %v1929_v9 = vpack.c.bf16 %v75_v7, %v74_v6  ;;  %v158_v10 = vld [vmem:[#allocation4] sm:$0xff]  ;;  %v159_v11 = vld [vmem:[#allocation4 + $0x8] sm:$0xff]  ;;  %v160_v13 = vld [vmem:[#allocation4 + $0x10] sm:$0xff]  ;;  %v65_v17 = vand.u32 127, %v64_v16  ;;  %vm150_vm3 = vcmask 130048  }
  0x28   :  { %1735 = vmatprep.mubr.msk.f32.mxu0 %vm2128_vm0, %v2129_v8  ;;  %1746 = vmatprep.mubr.msk.f32.mxu1 %vm2128_vm0, %v2129_v8  ;;  %v1932_v12 = vpack.c.bf16 %v159_v11, %v158_v10  ;;  %v161_v14 = vld [vmem:[#allocation4 + $0x18] sm:$0xff]  ;;  %v154_v18 = vld [vmem:[#allocation2] sm:$0xff]  ;;  %v155_v19 = vld [vmem:[#allocation2 + $0x8] sm:$0xff] }
  0x29   :  { %1927 = vmatpush3.bf16.msra.mxu0 %v1926_v5  ;;  %v1935_v15 = vpack.c.bf16 %v161_v14, %v160_v13  ;;  %v1938_v21 = vpack.c.bf16 %v155_v19, %v154_v18  ;;  %v156_v22 = vld [vmem:[#allocation2 + $0x10] sm:$0xff]  ;;  %v157_v23 = vld [vmem:[#allocation2 + $0x18] sm:$0xff]  ;;  %v322_v26 = vld [vmem:[#allocation4 + $0x20] sm:$0xff] }
  0x2a   :  { %1928 = vmatprep.subr.bf16.mxu0 %v2127_v1  ;;  %1933 = vmatpush3.bf16.msra.mxu1 %v1932_v12  ;;  %v1941_v25 = vpack.c.bf16 %v157_v23, %v156_v22  ;;  %v323_v27 = vld [vmem:[#allocation4 + $0x28] sm:$0xff]  ;;  %v152_v29 = vld [vmem:[%s2404_s2] sm:$0xff]  ;;  %v324_v30 = vld [vmem:[#allocation4 + $0x30] sm:$0xff] }
  0x2b   :  { %1934 = vmatprep.subr.bf16.mxu1 %v2127_v1  ;;  %v1944_v28 = vpack.c.bf16 %v323_v27, %v322_v26  ;;  %v325_v31 = vld [vmem:[#allocation4 + $0x38] sm:$0xff]  ;;  %v481_v33 = vld [vmem:[#allocation4 + $0x40] sm:$0xff]  ;;  %v482_v34 = vld [vmem:[#allocation4 + $0x48] sm:$0xff] }
  0x2c   :  { %v1947_v32 = vpack.c.bf16 %v325_v31, %v324_v30  ;;  %v1956_v35 = vpack.c.bf16 %v482_v34, %v481_v33  ;;  %v483_v36 = vld [vmem:[#allocation4 + $0x50] sm:$0xff]  ;;  %v484_v37 = vld [vmem:[#allocation4 + $0x58] sm:$0xff]  ;;  %v640_v39 = vld [vmem:[#allocation4 + $0x60] sm:$0xff] }
  0x2d   :  { %1930 = vmatpush3.bf16.msra.mxu0 %v1929_v9  ;;  %v1959_v38 = vpack.c.bf16 %v484_v37, %v483_v36  ;;  %v641_v40 = vld [vmem:[#allocation4 + $0x68] sm:$0xff]  ;;  %v642_v42 = vld [vmem:[#allocation4 + $0x70] sm:$0xff]  ;;  %v643_v43 = vld [vmem:[#allocation4 + $0x78] sm:$0xff] }
  0x2e   :  { %1937 = vmatprep.subr.bf16.mxu0 %v2127_v1  ;;  %1936 = vmatpush3.bf16.msra.mxu1 %v1935_v15  ;;  %v1968_v41 = vpack.c.bf16 %v641_v40, %v640_v39  ;;  %v1971_v44 = vpack.c.bf16 %v643_v43, %v642_v42  ;;  %v317_v45 = vld [vmem:[#allocation2 + $0x20] sm:$0xff]  ;;  %v318_v46 = vld [vmem:[#allocation2 + $0x28] sm:$0xff]  ;;  %v319_v49 = vld [vmem:[#allocation2 + $0x30] sm:$0xff] }
  0x2f   :  { %1943 = vmatprep.subr.bf16.mxu1 %v2127_v1  ;;  %v1950_v47 = vpack.c.bf16 %v318_v46, %v317_v45  ;;  %v320_v50 = vld [vmem:[#allocation2 + $0x38] sm:$0xff]  ;;  %v476_v54 = vld [vmem:[#allocation2 + $0x40] sm:$0xff]  ;;  %v477_v55 = vld [vmem:[#allocation2 + $0x48] sm:$0xff] }
  0x30   :  { %v1953_v53 = vpack.c.bf16 %v320_v50, %v319_v49  ;;  %v1962_v56 = vpack.c.bf16 %v477_v55, %v476_v54  ;;  %v478_v57 = vld [vmem:[#allocation2 + $0x50] sm:$0xff]  ;;  %v479_v58 = vld [vmem:[#allocation2 + $0x58] sm:$0xff]  ;;  %v635_v60 = vld [vmem:[#allocation2 + $0x60] sm:$0xff] }
  0x31   :  { %1747 = vmatmul.mubr.msk.f32.vlgmr.msra.gmra.mrb[0].mxu1 %vm76_vm1, %v152_v29  ;;  %v1965_v59 = vpack.c.bf16 %v479_v58, %v478_v57  ;;  %v636_v61 = vld [vmem:[#allocation2 + $0x68] sm:$0xff]  ;;  %v637_v63 = vld [vmem:[#allocation2 + $0x70] sm:$0xff]  ;;  %v638_v0 = vld [vmem:[#allocation2 + $0x78] sm:$0xff] }
  0x32   :  { %1945 = vmatpush3.bf16.msra.mxu1 %v1944_v28  ;;  %1768 = vmatprep.mubr.msk.f32.mxu1 %vm2128_vm0, %v2129_v8  ;;  %v1974_v62 = vpack.c.bf16 %v636_v61, %v635_v60  ;;  %v1977_v2 = vpack.c.bf16 %v638_v0, %v637_v63  ;;  %v829_v12 = vld [vmem:[#allocation4 + $0x80] sm:$0xff]  ;;  %v830_v13 = vld [vmem:[#allocation4 + $0x88] sm:$0xff]  ;;  %v832_v18 = vld [vmem:[#allocation4 + $0x98] sm:$0xff] }
  0x33   :  { %1946 = vmatprep.subr.bf16.mxu1 %v2127_v1  ;;  %v824_v14 = vld [vmem:[#allocation2 + $0x80] sm:$0xff]  ;;  %v1980_v15 = vpack.c.bf16 %v830_v13, %v829_v12  ;;  %v825_v16 = vld [vmem:[#allocation2 + $0x88] sm:$0xff]  ;;  %v996_v28 = vld [vmem:[#allocation4 + $0xb0] sm:$0xff] }
  0x34   :  { %v1986_v19 = vpack.c.bf16 %v825_v16, %v824_v14  ;;  %v1612_v26 = vld [vmem:[%s2404_s2 + $0x8] sm:$0xff]  ;;  %v1153_v31 = vld [vmem:[#allocation4 + $0xc0] sm:$0xff]  ;;  %v1155_v34 = vld [vmem:[#allocation4 + $0xd0] sm:$0xff] }
  0x35   :  { %v1312_v37 = vld [vmem:[#allocation4 + $0xe0] sm:$0xff]  ;;  %v1314_v40 = vld [vmem:[#allocation4 + $0xf0] sm:$0xff] }
  0x36   :  { %1948 = vmatpush3.bf16.msra.mxu1 %v1947_v32  ;;  %v1154_v32 = vld [vmem:[#allocation4 + $0xc8] sm:$0xff]  ;;  %v1600_v50 = vld [vmem:[%s2408_s6 + $0x1] ss:$0 sm:$0xff]  ;;  %v1608_v63 = vld [vmem:[%s2408_s6 + $0x3] ss:$0 sm:$0xff] }
  0x37   :  { %1955 = vmatprep.subr.bf16.mxu1 %v2127_v1  ;;  %v2004_v33 = vpack.c.bf16 %v1154_v32, %v1153_v31  ;;  %v153_v12 = vld [vmem:[%s2405_s3] sm:$0xff] }
  0x38   :  { %v1307_v32 = vld [vmem:[#allocation2 + $0xe0] sm:$0xff] }
  0x39   :  { %1769 = vmatmul.mubr.msk.f32.vlgmr.msra.gmra.mrb[2].mxu1 %vm76_vm1, %v152_v29 }
  0x3a   :  { %1957 = vmatpush3.bf16.msra.mxu1 %v1956_v35  ;;  %1790 = vmatprep.mubr.msk.f32.mxu1 %vm2128_vm0, %v2129_v8  ;;  %v1156_v35 = vld [vmem:[#allocation4 + $0xd8] sm:$0xff] }
  0x3b   :  { %1958 = vmatprep.subr.bf16.mxu1 %v2127_v1  ;;  %v2007_v36 = vpack.c.bf16 %v1156_v35, %v1155_v34  ;;  %v1309_v35 = vld [vmem:[#allocation2 + $0xf0] sm:$0xff] }
  0x3e   :  { %1960 = vmatpush3.bf16.msra.mxu1 %v1959_v38  ;;  %v1313_v38 = vld [vmem:[#allocation4 + $0xe8] sm:$0xff] }
  0x3f   :  { %1967 = vmatprep.subr.bf16.mxu1 %v2127_v1  ;;  %v2016_v39 = vpack.c.bf16 %v1313_v38, %v1312_v37 }
  0x41   :  { %1791 = vmatmul.mubr.msk.f32.vlgmr.msra.gmra.mrb[4].mxu1 %vm76_vm1, %v152_v29 }
  0x42   :  { %1969 = vmatpush3.bf16.msra.mxu1 %v1968_v41  ;;  %1812 = vmatprep.mubr.msk.f32.mxu1 %vm2128_vm0, %v2129_v8  ;;  %v1315_v41 = vld [vmem:[#allocation4 + $0xf8] sm:$0xff] }
  0x43   :  { %1970 = vmatprep.subr.bf16.mxu1 %v2127_v1  ;;  %v2019_v42 = vpack.c.bf16 %v1315_v41, %v1314_v40 }
  0x46   :  { %1972 = vmatpush3.bf16.msra.mxu1 %v1971_v44  ;;  %v1596_v44 = vld [vmem:[%s2408_s6] ss:$0 sm:$0xff] }
  0x47   :  { %1979 = vmatprep.subr.bf16.mxu1 %v2127_v1 }
  0x49   :  { %1813 = vmatmul.mubr.msk.f32.vlgmr.msra.gmra.mrb[6].mxu1 %vm76_vm1, %v152_v29  ;;  %v997_v29 = vld [vmem:[#allocation4 + $0xb8] sm:$0xff] }
  0x4a   :  { %1834 = vmatprep.mubr.msk.f32.mxu1 %vm2128_vm0, %v2129_v8  ;;  %1981 = vmatpush3.bf16.msra.mxu1 %v1980_v15  ;;  %v1995_v30 = vpack.c.bf16 %v997_v29, %v996_v28  ;;  %v1150_v29 = vld [vmem:[#allocation2 + $0xd0] sm:$0xff] }
  0x4b   :  { %1982 = vmatprep.subr.bf16.mxu1 %v2127_v1 }
  0xa6   :  { %v68_v20 = vpop.permute.xlu0 %67 }
  0xa7   :  { %vm69_vm2 = vcmp.eq.s32.totalorder %v65_v17, %v68_v20  ;;  %v831_v17 = vld [vmem:[#allocation4 + $0x90] sm:$0xff] }
  0xa8   :  { %v1592_v24 = vsel %vm69_vm2, 1.0, %v2129_v8  ;;  %v826_v20 = vld [vmem:[#allocation2 + $0x90] sm:$0xff]  ;;  %v1983_v22 = vpack.c.bf16 %v832_v18, %v831_v17  ;;  %v990_v18 = vld [vmem:[#allocation2 + $0xa8] sm:$0xff] }
  0xa9   :  { %1736 = vmatmul.mubr.msk.f32.vlgmr.msra.gmra.mrb[0].mxu0 %vm76_vm1, %v1592_v24  ;;  %v994_v24 = vld [vmem:[#allocation4 + $0xa0] sm:$0xff] }
  0xaa   :  { %1939 = vmatpush3.bf16.msra.mxu0 %v1938_v21  ;;  %1757 = vmatprep.mubr.msk.f32.mxu0 %vm2128_vm0, %v2129_v8  ;;  %v827_v21 = vld [vmem:[#allocation2 + $0x98] sm:$0xff] }
  0xab   :  { %1940 = vmatprep.subr.bf16.mxu0 %v2127_v1  ;;  %v1989_v23 = vpack.c.bf16 %v827_v21, %v826_v20  ;;  %1984 = vmatpush3.bf16.msra.mxu1 %v1983_v22 }
  0xac   :  { %1991 = vmatprep.subr.bf16.mxu1 %v2127_v1 }
  0xae   :  { %1942 = vmatpush3.bf16.msra.mxu0 %v1941_v25  ;;  %v995_v25 = vld [vmem:[#allocation4 + $0xa8] sm:$0xff]  ;;  %1835 = vmatmul.mubr.msk.f32.vlgmr.msra.gmra.mrb[8].mxu1 %vm76_vm1, %v1612_v26 }
  0xaf   :  { %1949 = vmatprep.subr.bf16.mxu0 %v2127_v1  ;;  %v1992_v27 = vpack.c.bf16 %v995_v25, %v994_v24  ;;  %1856 = vmatprep.mubr.msk.f32.mxu1 %vm2128_vm0, %v2129_v8  ;;  %v992_v24 = vld [vmem:[#allocation2 + $0xb8] sm:$0xff] }
  0xb1   :  { %1993 = vmatpush3.bf16.msra.mxu1 %v1992_v27  ;;  %v1149_v27 = vld [vmem:[#allocation2 + $0xc8] sm:$0xff] }
  0xb2   :  { %1994 = vmatprep.subr.bf16.mxu1 %v2127_v1 }
  0xb5   :  { %1996 = vmatpush3.bf16.msra.mxu1 %v1995_v30  ;;  %v1151_v30 = vld [vmem:[#allocation2 + $0xd8] sm:$0xff] }
  0xb6   :  { %2003 = vmatprep.subr.bf16.mxu1 %v2127_v1  ;;  %v2013_v31 = vpack.c.bf16 %v1151_v30, %v1150_v29 }
  0xb8   :  { %1857 = vmatmul.mubr.msk.f32.vlgmr.msra.gmra.mrb[10].mxu1 %vm76_vm1, %v1612_v26 }
  0xb9   :  { %2005 = vmatpush3.bf16.msra.mxu1 %v2004_v33  ;;  %1878 = vmatprep.mubr.msk.f32.mxu1 %vm2128_vm0, %v2129_v8  ;;  %v1308_v33 = vld [vmem:[#allocation2 + $0xe8] sm:$0xff] }
  0xba   :  { %2006 = vmatprep.subr.bf16.mxu1 %v2127_v1  ;;  %v2022_v34 = vpack.c.bf16 %v1308_v33, %v1307_v32 }
  0xbd   :  { %2008 = vmatpush3.bf16.msra.mxu1 %v2007_v36  ;;  %v1310_v36 = vld [vmem:[#allocation2 + $0xf8] sm:$0xff] }
  0xbe   :  { %2015 = vmatprep.subr.bf16.mxu1 %v2127_v1  ;;  %v2025_v37 = vpack.c.bf16 %v1310_v36, %v1309_v35 }
  0xc0   :  { %1879 = vmatmul.mubr.msk.f32.vlgmr.msra.gmra.mrb[12].mxu1 %vm76_vm1, %v1612_v26 }
  0xc1   :  { %2017 = vmatpush3.bf16.msra.mxu1 %v2016_v39  ;;  %1900 = vmatprep.mubr.msk.f32.mxu1 %vm2128_vm0, %v2129_v8 }
  0xc2   :  { %2018 = vmatprep.subr.bf16.mxu1 %v2127_v1 }
  0xc5   :  { %2020 = vmatpush3.bf16.msra.mxu1 %v2019_v42 }
  0xc6   :  { %2027 = vmatprep.subr.bf16.mxu1 %v2127_v1 }
  0xc8   :  { %1901 = vmatmul.mubr.msk.f32.vlgmr.msra.gmra.mrb[14].mxu1 %vm76_vm1, %v1612_v26  ;;  %v1148_v26 = vld [vmem:[#allocation2 + $0xc0] sm:$0xff] }
  0xc9   :  { %1922 = vmatprep.mubr.msk.f32.mxu1 %vm2128_vm0, %v2129_v8  ;;  %v2010_v28 = vpack.c.bf16 %v1149_v27, %v1148_v26  ;;  %v1635_v27 = vld [vmem:[%s2410_s8] ss:$0 sm:$0xff] }
 0x104   :  { %v2284_v3 = vpop.f32.mrb[0].mxu1 }
 0x105   :  { %v1748_v4 = vpop.f32.mrb[1].mxu1 }
 0x10c   :  { %v2286_v5 = vpop.f32.mrb[2].mxu1 }
 0x10d   :  { %v1770_v6 = vpop.f32.mrb[3].mxu1 }
 0x114   :  { %v2288_v7 = vpop.f32.mrb[4].mxu1 }
 0x115   :  { %v1792_v9 = vpop.f32.mrb[5].mxu1 }
 0x11c   :  { %v2290_v10 = vpop.f32.mrb[6].mxu1 }
 0x11d   :  { %v1814_v11 = vpop.f32.mrb[7].mxu1 }
 0x17c   :  { %v146_v48 = vpop.f32.mrb[0].mxu0 }
 0x17d   :  { %v151_v51 = vsel %vm150_vm3, %v146_v48, 0.0  ;;  %v1737_v52 = vpop.f32.mrb[1].mxu0 }
 0x17e   :  { %1758 = vmatmul.mubr.msk.f32.vlgmr.msra.gmra.mrb[2].mxu0 %vm76_vm1, %v151_v51 }
 0x17f   :  { %1951 = vmatpush3.bf16.msra.mxu0 %v1950_v47  ;;  %1779 = vmatprep.mubr.msk.f32.mxu0 %vm2128_vm0, %v2129_v8 }
 0x180   :  { %1952 = vmatprep.subr.bf16.mxu0 %v2127_v1 }
 0x181   :  { %v902_v38 = vpop.f32.mrb[8].mxu1 }
 0x182   :  { %v1836_v39 = vpop.f32.mrb[9].mxu1 }
 0x183   :  { %1954 = vmatpush3.bf16.msra.mxu0 %v1953_v53 }
 0x184   :  { %1961 = vmatprep.subr.bf16.mxu0 %v2127_v1 }
 0x186   :  { %1780 = vmatmul.mubr.msk.f32.vlgmr.msra.gmra.mrb[4].mxu0 %vm76_vm1, %v151_v51 }
 0x187   :  { %1963 = vmatpush3.bf16.msra.mxu0 %v1962_v56  ;;  %1801 = vmatprep.mubr.msk.f32.mxu0 %vm2128_vm0, %v2129_v8  ;;  %v1604_v56 = vld [vmem:[%s2408_s6 + $0x2] ss:$0 sm:$0xff] }
 0x188   :  { %1964 = vmatprep.subr.bf16.mxu0 %v2127_v1 }
 0x18b   :  { %1966 = vmatpush3.bf16.msra.mxu0 %v1965_v59  ;;  %v1064_v40 = vpop.f32.mrb[10].mxu1 }
 0x18c   :  { %1973 = vmatprep.subr.bf16.mxu0 %v2127_v1  ;;  %v1858_v41 = vpop.f32.mrb[11].mxu1 }
 0x18e   :  { %1802 = vmatmul.mubr.msk.f32.vlgmr.msra.gmra.mrb[6].mxu0 %vm76_vm1, %v151_v51 }
 0x18f   :  { %1975 = vmatpush3.bf16.msra.mxu0 %v1974_v62  ;;  %1823 = vmatprep.mubr.msk.f32.mxu0 %vm2128_vm0, %v2129_v8 }
 0x190   :  { %1976 = vmatprep.subr.bf16.mxu0 %v2127_v1 }
 0x193   :  { %1978 = vmatpush3.bf16.msra.mxu0 %v1977_v2  ;;  %v1223_v42 = vpop.f32.mrb[12].mxu1 }
 0x194   :  { %1985 = vmatprep.subr.bf16.mxu0 %v2127_v1 }
 0x196   :  { %1824 = vmatmul.mubr.msk.f32.vlgmr.msra.gmra.mrb[8].mxu0 %vm76_vm1, %v151_v51 }
 0x197   :  { %1845 = vmatprep.mubr.msk.f32.mxu0 %vm2128_vm0, %v2129_v8  ;;  %1987 = vmatpush3.bf16.msra.mxu0 %v1986_v19 }
 0x198   :  { %1988 = vmatprep.subr.bf16.mxu0 %v2127_v1 }
 0x19b   :  { %1990 = vmatpush3.bf16.msra.mxu0 %v1989_v23  ;;  %v991_v23 = vld [vmem:[#allocation2 + $0xb0] sm:$0xff] }
 0x19c   :  { %1997 = vmatprep.subr.bf16.mxu0 %v2127_v1  ;;  %v2001_v25 = vpack.c.bf16 %v992_v24, %v991_v23 }
 0x251   :  { %v304_v43 = vpop.f32.mrb[2].mxu0 }
 0x252   :  { %v305_v45 = vadd.f32 %v304_v43, %v2284_v3  ;;  %v1759_v46 = vpop.f32.mrb[3].mxu0  ;;  %v1880_v43 = vpop.f32.mrb[13].mxu1 }
 0x253   :  { %v1493_v46 = vld [vmem:[%s2409_s7] sm:$0xff] }
 0x254   :  { %v315_v47 = vadd.f32 %v1596_v44, %v305_v45  ;;  %v1382_v44 = vpop.f32.mrb[14].mxu1 }
 0x255   :  { %v1902_v45 = vpop.f32.mrb[15].mxu1 }
 0x256   :  { %v1609_v48 = vmul.f32 -1.442695, %v315_v47  ;;  %v1495_v47 = vld [vmem:[%s2409_s7 + $0x10] sm:$0xff] }
 0x258   :  { %2042 = vpow2.f32 %v1609_v48 }
 0x259   :  { %v462_v49 = vpop.f32.mrb[4].mxu0 }
 0x25a   :  { %v463_v51 = vadd.f32 %v462_v49, %v2286_v5  ;;  %v1781_v52 = vpop.f32.mrb[5].mxu0  ;;  %v1496_v49 = vld [vmem:[%s2409_s7 + $0x18] sm:$0xff] }
 0x25b   :  { %v1617_v52 = vld [vmem:[%s2408_s6 + $0x4] ss:$0 sm:$0xff] }
 0x25c   :  { %v474_v53 = vadd.f32 %v1600_v50, %v463_v51  ;;  %v2031_v50 = vpack.c.bf16 %v1496_v49, %v1495_v47 }
 0x25e   :  { %v1610_v54 = vmul.f32 -1.442695, %v474_v53 }
 0x260   :  { %2044 = vpow2.f32 %v1610_v54 }
 0x261   :  { %v621_v55 = vpop.f32.mrb[6].mxu0 }
 0x262   :  { %v2043_v57 = vpop.eup %2042  ;;  %v622_v58 = vadd.f32 %v621_v55, %v2288_v7  ;;  %v1803_v59 = vpop.f32.mrb[7].mxu0 }
 0x263   :  { %v796_v60 = vadd.f32 1.0, %v2043_v57 }
 0x264   :  { %v633_v61 = vadd.f32 %v1604_v56, %v622_v58  ;;  %v1621_v58 = vld [vmem:[%s2408_s6 + $0x5] ss:$0 sm:$0xff] }
 0x265   :  { %2046 = vrcp.f32 %v796_v60 }
 0x266   :  { %2048 = vtanh.f32 %v633_v61 }
 0x269   :  { %v780_v62 = vpop.f32.mrb[8].mxu0 }
 0x26a   :  { %v2045_v0 = vpop.eup %2044  ;;  %v781_v2 = vadd.f32 %v780_v62, %v2290_v10  ;;  %v1825_v3 = vpop.f32.mrb[9].mxu0  ;;  %v989_v10 = vld [vmem:[#allocation2 + $0xa0] sm:$0xff] }
 0x26b   :  { %v802_v4 = vadd.f32 1.0, %v2045_v0  ;;  %v1998_v21 = vpack.c.bf16 %v990_v18, %v989_v10 }
 0x26c   :  { %v792_v5 = vadd.f32 %v1608_v63, %v781_v2  ;;  %v1625_v63 = vld [vmem:[%s2408_s6 + $0x6] ss:$0 sm:$0xff] }
 0x26d   :  { %2050 = vrcp.f32 %v802_v4 }
 0x26e   :  { %v1611_v6 = vmul.f32 -1.442695, %v792_v5 }
 0x26f   :  { %v2047_v9 = vpop.eup %2046 }
 0x270   :  { %v2049_v7 = vpop.eup %2048  ;;  %2052 = vpow2.f32 %v1611_v6 }
 0x271   :  { %v813_v11 = vmul.f32 %v2049_v7, %v2047_v9  ;;  %v1629_v9 = vld [vmem:[%s2408_s6 + $0x7] ss:$0 sm:$0xff] }
 0x277   :  { %v2051_v13 = vpop.eup %2050 }
 0x278   :  { %v812_v14 = vmul.f32 %v2051_v13, %v153_v12 }
 0x27a   :  { %v2053_v15 = vpop.eup %2052  ;;  %v814_v16 = vadd.f32 %v813_v11, %v812_v14 }
 0x27b   :  { %v809_v17 = vadd.f32 1.0, %v2053_v15 }
 0x27c   :  { %2054 = vtanh.f32 %v814_v16  ;;  %818 = vst.msk [vmem:[%s2413_s11] sm:$0xff] %vm76_vm1, %v814_v16 }
 0x27d   :  { %2056 = vrcp.f32 %v809_v17 }
 0x283   :  { %v1613_v18 = vld [vmem:[%s2405_s3 + $0x8] sm:$0xff] }
 0x286   :  { %v2055_v19 = vpop.eup %2054 }
 0x287   :  { %v2057_v20 = vpop.eup %2056 }
 0x288   :  { %v816_v22 = vmul.f32 %v2057_v20, %v2055_v19 }
 0x28a   :  { %817 = vst.msk [vmem:[%s2412_s10] sm:$0xff] %vm76_vm1, %v816_v22  ;;  %1846 = vmatmul.mubr.msk.f32.vlgmr.msra.gmra.mrb[10].mxu0 %vm76_vm1, %v816_v22 }
 0x28b   :  { %1999 = vmatpush3.bf16.msra.mxu0 %v1998_v21  ;;  %1867 = vmatprep.mubr.msk.f32.mxu0 %vm2128_vm0, %v2129_v8 }
 0x28c   :  { %2000 = vmatprep.subr.bf16.mxu0 %v2127_v1 }
 0x28f   :  { %2002 = vmatpush3.bf16.msra.mxu0 %v2001_v25 }
 0x290   :  { %2009 = vmatprep.subr.bf16.mxu0 %v2127_v1 }
 0x292   :  { %1868 = vmatmul.mubr.msk.f32.vlgmr.msra.gmra.mrb[12].mxu0 %vm76_vm1, %v816_v22 }
 0x293   :  { %2011 = vmatpush3.bf16.msra.mxu0 %v2010_v28  ;;  %1889 = vmatprep.mubr.msk.f32.mxu0 %vm2128_vm0, %v2129_v8 }
 0x294   :  { %2012 = vmatprep.subr.bf16.mxu0 %v2127_v1 }
 0x297   :  { %2014 = vmatpush3.bf16.msra.mxu0 %v2013_v31 }
 0x298   :  { %2021 = vmatprep.subr.bf16.mxu0 %v2127_v1 }
 0x29a   :  { %1890 = vmatmul.mubr.msk.f32.vlgmr.msra.gmra.mrb[14].mxu0 %vm76_vm1, %v816_v22 }
 0x29b   :  { %2023 = vmatpush3.bf16.msra.mxu0 %v2022_v34  ;;  %1911 = vmatprep.mubr.msk.f32.mxu0 %vm2128_vm0, %v2129_v8  ;;  %v1494_v8 = vld [vmem:[%s2409_s7 + $0x8] sm:$0xff] }
 0x29c   :  { %2024 = vmatprep.subr.bf16.mxu0 %v2127_v1  ;;  %v2028_v48 = vpack.c.bf16 %v1494_v8, %v1493_v46 }
 0x29e   :  { %2029 = vmatpush3.bf16.msra.mxu1 %v2028_v48 }
 0x29f   :  { %2026 = vmatpush3.bf16.msra.mxu0 %v2025_v37  ;;  %2030 = vmatprep.subr.bf16.mxu1 %v2127_v1 }
 0x2a2   :  { %1912 = vmatmul.mubr.msk.f32.vlgmr.msra.gmra.mrb[16].mxu0 %vm76_vm1, %v816_v22  ;;  %2032 = vmatpush3.bf16.msra.mxu1 %v2031_v50 }
 0x35d   :  { %v975_v51 = vpop.f32.mrb[10].mxu0 }
 0x35e   :  { %v976_v53 = vadd.f32 %v975_v51, %v902_v38  ;;  %v1847_v54 = vpop.f32.mrb[11].mxu0 }
 0x360   :  { %v987_v55 = vadd.f32 %v1617_v52, %v976_v53 }
 0x362   :  { %v1630_v56 = vmul.f32 -1.442695, %v987_v55 }
 0x364   :  { %2058 = vpow2.f32 %v1630_v56 }
 0x365   :  { %v1134_v57 = vpop.f32.mrb[12].mxu0 }
 0x366   :  { %v1135_v59 = vadd.f32 %v1134_v57, %v1064_v40  ;;  %v1869_v60 = vpop.f32.mrb[13].mxu0 }
 0x368   :  { %v1146_v61 = vadd.f32 %v1621_v58, %v1135_v59 }
 0x36a   :  { %v1631_v1 = vmul.f32 -1.442695, %v1146_v61 }
 0x36c   :  { %2060 = vpow2.f32 %v1631_v1 }
 0x36d   :  { %v1293_v62 = vpop.f32.mrb[14].mxu0 }
 0x36e   :  { %v2059_v0 = vpop.eup %2058  ;;  %v1294_v2 = vadd.f32 %v1293_v62, %v1223_v42  ;;  %v1891_v3 = vpop.f32.mrb[15].mxu0 }
 0x36f   :  { %v1468_v4 = vadd.f32 1.0, %v2059_v0 }
 0x370   :  { %v1305_v5 = vadd.f32 %v1625_v63, %v1294_v2 }
 0x371   :  { %2062 = vrcp.f32 %v1468_v4 }
 0x372   :  { %2064 = vtanh.f32 %v1305_v5 }
 0x375   :  { %v1452_v6 = vpop.f32.mrb[16].mxu0 }
 0x376   :  { %v2061_v7 = vpop.eup %2060  ;;  %v1453_v11 = vadd.f32 %v1452_v6, %v1382_v44  ;;  %v1913_v12 = vpop.f32.mrb[17].mxu0 }
 0x377   :  { %v1474_v13 = vadd.f32 1.0, %v2061_v7 }
 0x378   :  { %v1464_v14 = vadd.f32 %v1629_v9, %v1453_v11 }
 0x379   :  { %2066 = vrcp.f32 %v1474_v13 }
 0x37a   :  { %v1632_v15 = vmul.f32 -1.442695, %v1464_v14 }
 0x37b   :  { %v2063_v16 = vpop.eup %2062 }
 0x37c   :  { %v2065_v17 = vpop.eup %2064  ;;  %2068 = vpow2.f32 %v1632_v15 }
 0x37d   :  { %v1485_v10 = vmul.f32 %v2065_v17, %v2063_v16 }
 0x383   :  { %v2067_v19 = vpop.eup %2066 }
 0x384   :  { %v1484_v20 = vmul.f32 %v2067_v19, %v1613_v18 }
 0x386   :  { %v2069_v21 = vpop.eup %2068  ;;  %v1486_v22 = vadd.f32 %v1485_v10, %v1484_v20 }
 0x387   :  { %v1481_v23 = vadd.f32 1.0, %v2069_v21 }
 0x388   :  { %2070 = vtanh.f32 %v1486_v22  ;;  %1634 = vst.msk [vmem:[%s2413_s11 + $0x8] sm:$0xff] %vm76_vm1, %v1486_v22 }
 0x389   :  { %2072 = vrcp.f32 %v1481_v23 }
 0x392   :  { %v2071_v24 = vpop.eup %2070 }
 0x393   :  { %v2073_v25 = vpop.eup %2072 }
 0x394   :  { %v1488_v26 = vmul.f32 %v2073_v25, %v2071_v24 }
 0x396   :  { %1633 = vst.msk [vmem:[%s2412_s10 + $0x8] sm:$0xff] %vm76_vm1, %v1488_v26  ;;  %1923 = vmatmul.mubr.msk.f32.vlgmr.msra.gmra.mrb[16].mxu1 %vm76_vm1, %v1488_v26 }
 0x469   :  { %v1573_v28 = vpop.f32.mrb[16].mxu1 }
 0x46a   :  { %v1574_v29 = vadd.f32 %v1635_v27, %v1573_v28  ;;  %v1924_v30 = vpop.f32.mrb[17].mxu1 }
 0x46c   :  { %1577 = vst [vmem:[%s2411_s9] sm:$0xff] %v1574_v29 }
 0x46d   :  { %1590 = vsyncpa [#allocation3], 1 }
 0x46e   :  { %1591 = vsyncpa [#allocation5], 1 }

</bundles_post_ra>
